<compile_context>
chip_gen: v7x
topology: tpu7x:2x2x1
jax: 0.10.0
libtpu: 0.0.40
codegen_flags: <defaults>
</compile_context>

<pallas_src>
import jax
import jax.numpy as jnp
from jax.experimental import pallas as pl
from jax.experimental.pallas import tpu as pltpu

LANE = 128


def _hswish_kernel(x_ref, o_ref):
    x = x_ref[...]
    xf = x.astype(jnp.float32)
    r6 = jnp.clip(xf + 3.0, 0.0, 6.0)          # relu6(x + 3); garbage in masked
    # edge rows is computed then dropped by the masked store -- intentional.
    o_ref[...] = (xf * r6 * (1.0 / 6.0)).astype(o_ref.dtype)


def _hswish_jnp(x):
    """Plain-jnp fallback for tiny ragged tails (< 128 elements)."""
    xf = x.astype(jnp.float32)
    return (xf * jnp.clip(xf + 3.0, 0.0, 6.0) * (1.0 / 6.0)).astype(x.dtype)


def _device_tuning():
    """Per-generation (target_block_bytes, vmem_limit_bytes)."""
    try:
        kind = jax.devices()[0].device_kind.lower()
    except Exception:
        kind = ""
    if "tpu7" in kind or "v7" in kind:
        # v7x: bigger blocks to amortize ~0.35 us/step at 3.2 TB/s HBM.
        # 8 MiB blocks -> 32 MiB double-buffered (in+out); 48 MiB scoped < 64 MiB phys.
        return 8 * 1024 * 1024, 48 * 1024 * 1024
    if "v6" in kind:
        # 4 MiB blocks -> 16 MiB double-buffered, inside the 32 MiB scoped default.
        return 4 * 1024 * 1024, 32 * 1024 * 1024
    # v5e (16 MiB scoped-VMEM default) and older/unknown: 2 MiB blocks, ~8 MiB
    # double-buffered, no need to raise the scoped limit.
    return 2 * 1024 * 1024, None


def hswish(x, *, target_block_bytes=None, vmem_limit_bytes=None, donate_input=False):
    """Elementwise h-swish: x * relu6(x + 3) / 6.  Any shape / dtype."""
    orig_shape = x.shape
    dtype = x.dtype
    n = x.size
    if n == 0:
        return x

    default_block, default_vmem = _device_tuning()
    if target_block_bytes is None:
        target_block_bytes = default_block
    if vmem_limit_bytes is None:
        vmem_limit_bytes = default_vmem

    itemsize = jnp.dtype(dtype).itemsize
    # Sublane packing factor: f32 -> 8 rows, bf16/f16 -> 16, int8/fp8 -> 32.
    row_align = {4: 8, 2: 16, 1: 32}.get(itemsize, 8)

    x_flat = jnp.ravel(x)                      # free (bitcast) for contiguous arrays
    n_main = (n // LANE) * LANE
    n_tail = n - n_main

    out_parts = []

    if n_main > 0:
        rows = n_main // LANE
        x2d = x_flat[:n_main].reshape(rows, LANE)

        target_rows = max(
            row_align,
            ((target_block_bytes // (LANE * itemsize)) // row_align) * row_align,
        )
        block_rows = rows if rows <= target_rows else target_rows

        # If everything fits in a single block but the input is big enough to
        # matter, split into (at least) 2 grid steps so v7x's two TensorCores
        # both get work on the "parallel" axis.
        if (block_rows >= rows
                and rows >= 2 * row_align
                and rows * LANE * itemsize >= (512 << 10)):
            half = pl.cdiv(rows, 2)
            block_rows = ((half + row_align - 1) // row_align) * row_align

        grid = (pl.cdiv(rows, block_rows),)

        cost = pl.CostEstimate(
            flops=4 * n_main,
            transcendentals=0,
            bytes_accessed=2 * n_main * itemsize,
        )

        out2d = pl.pallas_call(
            _hswish_kernel,
            out_shape=jax.ShapeDtypeStruct((rows, LANE), dtype),
            grid=grid,
            in_specs=[pl.BlockSpec((block_rows, LANE), lambda i: (i, 0))],
            out_specs=pl.BlockSpec((block_rows, LANE), lambda i: (i, 0)),
            compiler_params=pltpu.CompilerParams(
                dimension_semantics=("parallel",),
                vmem_limit_bytes=vmem_limit_bytes,
            ),
            cost_estimate=cost,
            # Opt-in donation only when the whole array goes through the kernel
            # (on the ragged path x2d is a derived slice, so aliasing it would
            # not actually save the caller anything).
            input_output_aliases=({0: 0} if (donate_input and n_tail == 0) else {}),
        )(x2d)
        out_parts.append(out2d.reshape(-1))

    if n_tail > 0:
        # Ragged remainder (< 128 elements): tiny jnp epilogue; keeps the hot
        # path at exactly one read + one write (no full-array pad/slice).
        out_parts.append(_hswish_jnp(x_flat[n_main:]))

    out_flat = out_parts[0] if len(out_parts) == 1 else jnp.concatenate(out_parts)
    return out_flat.reshape(orig_shape)


def hswish_ref(x):
    xf = x.astype(jnp.float32)
    return (xf * jnp.clip(xf + 3.0, 0.0, 6.0) / 6.0).astype(x.dtype)


if __name__ == "__main__":
    key = jax.random.PRNGKey(0)
    # NCHW input, consistent with typical PyTorch usage of HSwish.
    x = jax.random.normal(key, (2, 4, 16, 16), dtype=jnp.float32) * 4.0

    y = jax.jit(hswish)(x)
    jax.block_until_ready(y)

    y_ref = hswish_ref(x)
    assert y.shape == x.shape and y.dtype == x.dtype
    assert jnp.allclose(y, y_ref, atol=1e-6, rtol=1e-6)

    # Exercise the ragged-tail (main + jnp remainder) path as well.
    x2 = jax.random.normal(jax.random.PRNGKey(1), (1000,), dtype=jnp.float32) * 4.0
    y2 = jax.jit(hswish)(x2)
    jax.block_until_ready(y2)
    assert jnp.allclose(y2, hswish_ref(x2), atol=1e-6, rtol=1e-6)

    print("KERNEL_OK")
</pallas_src>

<mosaic_0001>
module attributes {stable_mosaic.version = 11 : i64} {
  func.func @_hswish_kernel(%arg0: i32, %arg1: memref<16x128xf32, #tpu.memory_space<vmem>>, %arg2: memref<16x128xf32, #tpu.memory_space<vmem>>) attributes {dimension_semantics = [#tpu.dimension_semantics<parallel>], iteration_bounds = array<i64: 1>, scalar_prefetch = 0 : i64, scratch_operands = 0 : i64, tpu.core_type = #tpu.core_type<tc>, window_params = [{transform_indices = @transform_0, window_bounds = array<i64: 16, 128>}, {transform_indices = @transform_1, window_bounds = array<i64: 16, 128>}]} {
    %c0 = arith.constant 0 : index
    %c0_0 = arith.constant 0 : index
    %0 = vector.load %arg1[%c0, %c0_0] : memref<16x128xf32, #tpu.memory_space<vmem>>, vector<16x128xf32>
    %cst = arith.constant 3.000000e+00 : f32
    %1 = vector.broadcast %cst : f32 to vector<16x128xf32>
    %2 = arith.addf %0, %1 : vector<16x128xf32>
    %cst_1 = arith.constant 0.000000e+00 : f32
    %cst_2 = arith.constant 6.000000e+00 : f32
    %3 = vector.broadcast %cst_1 : f32 to vector<16x128xf32>
    %4 = arith.maximumf %3, %2 : vector<16x128xf32>
    %5 = vector.broadcast %cst_2 : f32 to vector<16x128xf32>
    %6 = arith.minimumf %5, %4 : vector<16x128xf32>
    %7 = arith.mulf %0, %6 : vector<16x128xf32>
    %cst_3 = arith.constant 0.166666672 : f32
    %8 = vector.broadcast %cst_3 : f32 to vector<16x128xf32>
    %9 = arith.mulf %7, %8 : vector<16x128xf32>
    %c0_4 = arith.constant 0 : index
    %c0_5 = arith.constant 0 : index
    %10 = vector.load %arg2[%c0_4, %c0_5] : memref<16x128xf32, #tpu.memory_space<vmem>>, vector<16x128xf32>
    tpu.vector_store %arg2[%c0_4, %c0_5], %9 {strides = array<i32>} : memref<16x128xf32, #tpu.memory_space<vmem>>, vector<16x128xf32>,
    return
  }
  func.func @transform_0(%arg0: i32) -> (i32, i32) {
    %c0_i32 = arith.constant 0 : i32
    %c0_i32_0 = arith.constant 0 : i32
    return %arg0, %c0_i32 : i32, i32
  }
  func.func @transform_1(%arg0: i32) -> (i32, i32) {
    %c0_i32 = arith.constant 0 : i32
    %c0_i32_0 = arith.constant 0 : i32
    return %arg0, %c0_i32 : i32, i32
  }
}

</mosaic_0001>

<bundles_post_ra>
// kernel: hswish.1
= control target key start
LH: loop header
LB: loop body
LE: loop exit
PB: predicated region body
PF: predicated region fallthrough
CT: control target
= control target key end

     0   :  { %s48_s0 = inlined_call_operand.vmem [shape: f32[16,128], index: 0, kind: input, shape index: {}]   ;;  %s49_s1 = inlined_call_operand.vmem [shape: f32[16,128], index: 1, kind: output, shape index: {}]  }
   0x1   :  { %v8_v0 = vld [vmem:[%s48_s0] sm:$0xff]  ;;  %v9_v1 = vld [vmem:[%s48_s0 + $0x8] sm:$0xff] }
   0x2   :  { %v10_v2 = vadd.f32 3.0, %v8_v0  ;;  %v11_v3 = vadd.f32 3.0, %v9_v1 }
   0x4   :  { %v12_v4 = vmax.f32 %v10_v2, 0.0  ;;  %v13_v5 = vmax.f32 %v11_v3, 0.0 }
   0x6   :  { %v14_v6 = vmin.f32 %v12_v4, 6.0  ;;  %v15_v7 = vmin.f32 %v13_v5, 6.0 }
   0x8   :  { %v16_v8 = vmul.f32 %v14_v6, %v8_v0  ;;  %v17_v9 = vmul.f32 %v15_v7, %v9_v1 }
   0xa   :  { %v18_v10 = vmul.f32 0.16666667, %v16_v8  ;;  %v19_v11 = vmul.f32 0.16666667, %v17_v9 }
   0xc   :  { %20 = vst [vmem:[%s49_s1] sm:$0xff] %v18_v10  ;;  %21 = vst [vmem:[%s49_s1 + $0x8] sm:$0xff] %v19_v11 }

</bundles_post_ra>
